<compile_context>
chip_gen: v7x
topology: tpu7x:2x2x1
jax: 0.10.0
libtpu: 0.0.40
codegen_flags: <defaults>
</compile_context>

<pallas_src>
import functools

import jax
import jax.numpy as jnp
from jax.experimental import pallas as pl
from jax.experimental.pallas import tpu as pltpu


def _masked_mean_kernel(x_ref, m_ref, out_ref, acc_ref, den_ref):
    # x_ref: (TN, TL, H), m_ref: (TN, TL), out_ref: (TN, H)
    li = pl.program_id(1)

    @pl.when(li == 0)
    def _():
        acc_ref[...] = jnp.zeros_like(acc_ref)
        den_ref[...] = jnp.zeros_like(den_ref)

    x = x_ref[...].astype(jnp.float32)            # (TN, TL, H)
    m = m_ref[...].astype(jnp.float32)            # (TN, TL), lane-dense

    acc_ref[...] += jnp.sum(x * m[:, :, None], axis=1)        # (TN, H)
    den_ref[...] += jnp.sum(m, axis=1, keepdims=True)         # (TN, 1)

    @pl.when(li == pl.num_programs(1) - 1)
    def _():
        # Matches torch: sum_features / input_mask.sum(dim=1, keepdim=True).
        # (All-masked rows produce inf/nan, exactly like the PyTorch module.)
        out_ref[...] = (acc_ref[...] / den_ref[...]).astype(out_ref.dtype)


def _mean_kernel(x_ref, out_ref, acc_ref, *, inv_len):
    # x_ref: (TN, TL, H), out_ref: (TN, H)
    li = pl.program_id(1)

    @pl.when(li == 0)
    def _():
        acc_ref[...] = jnp.zeros_like(acc_ref)

    acc_ref[...] += jnp.sum(x_ref[...].astype(jnp.float32), axis=1)

    @pl.when(li == pl.num_programs(1) - 1)
    def _():
        out_ref[...] = (acc_ref[...] * inv_len).astype(out_ref.dtype)


def mean_pooling(features, input_mask=None, *, tn=8, tl_max=2048):
    """Pallas TPU implementation of MeanPooling.forward."""
    if features.ndim == 2:
        # torch: `if features.dim() == 2: return features`
        return features

    N, L, H = features.shape
    out_dtype = features.dtype

    # ---- tile selection -----------------------------------------------------
    tn = int(tn) if N >= tn else int(N)           # batch rows per grid step
    n_pad = int(pl.cdiv(N, tn)) * tn

    # Bound the double-buffered x block (2 * tn * tl * H * itemsize) to ~8 MiB
    # so it fits comfortably in VMEM on v5e/v6e (32 MiB scoped default) and on
    # v7x's 64 MiB physical VMEM.
    itemsize = jnp.dtype(features.dtype).itemsize
    budget = 8 * 1024 * 1024
    tl_fit = budget // (2 * tn * H * itemsize)
    tl_cap = max(128, (min(int(tl_max), int(tl_fit)) // 128) * 128)
    if L > tl_cap:
        tl = tl_cap                               # multiple of 128 (mask lane dim)
        l_pad = int(pl.cdiv(L, tl)) * tl
    else:
        tl = L                                    # single L step, full-extent block
        l_pad = L

    grid = (n_pad // tn, l_pad // tl)

    # ---- pad inputs (padded zeros are no-ops for both kernels) --------------
    x = features
    if (n_pad, l_pad) != (N, L):
        x = jnp.pad(x, ((0, n_pad - N), (0, l_pad - L), (0, 0)))

    compiler_params = pltpu.CompilerParams(
        dimension_semantics=("parallel", "arbitrary"))

    if input_mask is None:
        kernel = functools.partial(_mean_kernel, inv_len=float(1.0 / L))
        out = pl.pallas_call(
            kernel,
            out_shape=jax.ShapeDtypeStruct((n_pad, H), out_dtype),
            grid_spec=pltpu.PrefetchScalarGridSpec(
                num_scalar_prefetch=0,
                grid=grid,
                in_specs=[pl.BlockSpec((tn, tl, H), lambda b, l: (b, l, 0))],
                out_specs=pl.BlockSpec((tn, H), lambda b, l: (b, 0)),
                scratch_shapes=[pltpu.VMEM((tn, H), jnp.float32)],
            ),
            compiler_params=compiler_params,
        )(x)
    else:
        m = input_mask
        if m.ndim == 3:                           # accept (N, L, 1) as well
            m = m[..., 0]
        if (n_pad, l_pad) != (N, L):
            m = jnp.pad(m, ((0, n_pad - N), (0, l_pad - L)))
        out = pl.pallas_call(
            _masked_mean_kernel,
            out_shape=jax.ShapeDtypeStruct((n_pad, H), out_dtype),
            grid_spec=pltpu.PrefetchScalarGridSpec(
                num_scalar_prefetch=0,
                grid=grid,
                in_specs=[
                    pl.BlockSpec((tn, tl, H), lambda b, l: (b, l, 0)),
                    pl.BlockSpec((tn, tl), lambda b, l: (b, l)),
                ],
                out_specs=pl.BlockSpec((tn, H), lambda b, l: (b, 0)),
                scratch_shapes=[
                    pltpu.VMEM((tn, H), jnp.float32),   # running masked sum
                    pltpu.VMEM((tn, 1), jnp.float32),   # running mask count
                ],
            ),
            compiler_params=compiler_params,
        )(x, m)

    return out[:N] if n_pad != N else out


def _reference(features, input_mask=None):
    # pure-JAX mirror of the PyTorch MeanPooling.forward
    if features.ndim == 2:
        return features
    f = features.astype(jnp.float32)
    if input_mask is not None:
        mk = input_mask.astype(jnp.float32)
        masked = f * mk[:, :, None]
        return jnp.sum(masked, axis=1) / jnp.sum(mk, axis=1, keepdims=True)
    return jnp.mean(f, axis=1)


if __name__ == "__main__":
    key = jax.random.PRNGKey(0)
    k1, k2, k3 = jax.random.split(key, 3)

    # Case 1: small (N, L, H) with a padding mask.
    N, L, H = 2, 8, 32
    x = jax.random.normal(k1, (N, L, H), dtype=jnp.float32)
    mask = jnp.ones((N, L), dtype=jnp.float32).at[:, L - 3:].set(0.0)

    out = jax.block_until_ready(mean_pooling(x, mask))
    assert out.shape == (N, H)
    assert jnp.allclose(out, _reference(x, mask), atol=1e-5, rtol=1e-5)

    # Case 2: no mask (dedicated kernel path, plain mean over L).
    out_nm = jax.block_until_ready(mean_pooling(x, None))
    assert jnp.allclose(out_nm, _reference(x, None), atol=1e-5, rtol=1e-5)

    # Case 3: exercises batch padding (N=10 -> TN=8 blocks), L tiling
    # (L=200 -> TL=128, padded to 256) and the accumulator across L steps.
    N2, L2, H2 = 10, 200, 128
    x2 = jax.random.normal(k2, (N2, L2, H2), dtype=jnp.float32)
    lens = (jnp.arange(1, N2 + 1) * 17) % L2 + 1          # >= 1 valid position/row
    mask2 = (jnp.arange(L2)[None, :] < lens[:, None]).astype(jnp.float32)

    out2 = jax.block_until_ready(mean_pooling(x2, mask2, tl_max=128))
    assert jnp.allclose(out2, _reference(x2, mask2), atol=1e-4, rtol=1e-4)
    out2_nm = jax.block_until_ready(mean_pooling(x2, None, tl_max=128))
    assert jnp.allclose(out2_nm, _reference(x2, None), atol=1e-4, rtol=1e-4)

    # Case 4: 2-D input passes through unchanged (matches the torch early-return).
    y = jax.random.normal(k3, (4, 16), dtype=jnp.float32)
    assert jnp.array_equal(mean_pooling(y), y)

    print("KERNEL_OK")
</pallas_src>

<mosaic_0001>
module attributes {stable_mosaic.version = 11 : i64} {
  func.func @_masked_mean_kernel(%arg0: i32, %arg1: i32, %arg2: memref<2x8x32xf32, #tpu.memory_space<vmem>>, %arg3: memref<2x8xf32, #tpu.memory_space<vmem>>, %arg4: memref<2x32xf32, #tpu.memory_space<vmem>>, %arg5: memref<2x32xf32, #tpu.memory_space<vmem>>, %arg6: memref<2x1xf32, #tpu.memory_space<vmem>>) attributes {dimension_semantics = [#tpu.dimension_semantics<parallel>, #tpu.dimension_semantics<arbitrary>], iteration_bounds = array<i64: 1, 1>, scalar_prefetch = 0 : i64, scratch_operands = 2 : i64, tpu.core_type = #tpu.core_type<tc>, window_params = [{transform_indices = @transform_0, window_bounds = array<i64: 2, 8, 32>}, {transform_indices = @transform_1, window_bounds = array<i64: 2, 8>}, {transform_indices = @transform_2, window_bounds = array<i64: 2, 32>}]} {
    %c0_i32 = arith.constant 0 : i32
    %0 = arith.cmpi eq, %arg1, %c0_i32 : i32
    %1 = arith.extui %0 : i1 to i32
    %c0_i32_0 = arith.constant 0 : i32
    %2 = arith.cmpi ne, %1, %c0_i32_0 : i32
    scf.if %2 {
      %cst_16 = arith.constant 0.000000e+00 : f32
      %20 = vector.broadcast %cst_16 : f32 to vector<2x32xf32>
      %c0_17 = arith.constant 0 : index
      %c0_18 = arith.constant 0 : index
      %21 = vector.load %arg5[%c0_17, %c0_18] : memref<2x32xf32, #tpu.memory_space<vmem>>, vector<2x32xf32>
      tpu.vector_store %arg5[%c0_17, %c0_18], %20 {strides = array<i32>} : memref<2x32xf32, #tpu.memory_space<vmem>>, vector<2x32xf32>,
      %cst_19 = arith.constant 0.000000e+00 : f32
      %22 = vector.broadcast %cst_19 : f32 to vector<2x1xf32>
      %c0_20 = arith.constant 0 : index
      %c0_21 = arith.constant 0 : index
      %23 = vector.load %arg6[%c0_20, %c0_21] : memref<2x1xf32, #tpu.memory_space<vmem>>, vector<2x1xf32>
      tpu.vector_store %arg6[%c0_20, %c0_21], %22 {strides = array<i32>} : memref<2x1xf32, #tpu.memory_space<vmem>>, vector<2x1xf32>,
    } else {
    }
    %c0 = arith.constant 0 : index
    %c0_1 = arith.constant 0 : index
    %c0_2 = arith.constant 0 : index
    %3 = vector.load %arg2[%c0, %c0_1, %c0_2] : memref<2x8x32xf32, #tpu.memory_space<vmem>>, vector<2x8x32xf32>
    %c0_3 = arith.constant 0 : index
    %c0_4 = arith.constant 0 : index
    %4 = vector.load %arg3[%c0_3, %c0_4] : memref<2x8xf32, #tpu.memory_space<vmem>>, vector<2x8xf32>
    %c0_5 = arith.constant 0 : index
    %c0_6 = arith.constant 0 : index
    %5 = vector.load %arg5[%c0_5, %c0_6] : memref<2x32xf32, #tpu.memory_space<vmem>>, vector<2x32xf32>
    %6 = vector.shape_cast %4 : vector<2x8xf32> to vector<2x8x1xf32>
    %7 = vector.broadcast %6 : vector<2x8x1xf32> to vector<2x8x32xf32>
    %8 = arith.mulf %3, %7 : vector<2x8x32xf32>
    %cst = arith.constant dense<0.000000e+00> : vector<2x32xf32>
    %9 = vector.multi_reduction <add>, %8, %cst [1] : vector<2x8x32xf32> to vector<2x32xf32>
    %10 = arith.addf %5, %9 : vector<2x32xf32>
    %c0_7 = arith.constant 0 : index
    %c0_8 = arith.constant 0 : index
    %11 = vector.load %arg5[%c0_7, %c0_8] : memref<2x32xf32, #tpu.memory_space<vmem>>, vector<2x32xf32>
    tpu.vector_store %arg5[%c0_7, %c0_8], %10 {strides = array<i32>} : memref<2x32xf32, #tpu.memory_space<vmem>>, vector<2x32xf32>,
    %c0_9 = arith.constant 0 : index
    %c0_10 = arith.constant 0 : index
    %12 = vector.load %arg6[%c0_9, %c0_10] : memref<2x1xf32, #tpu.memory_space<vmem>>, vector<2x1xf32>
    %cst_11 = arith.constant dense<0.000000e+00> : vector<2xf32>
    %13 = vector.multi_reduction <add>, %4, %cst_11 [1] : vector<2x8xf32> to vector<2xf32>
    %14 = vector.shape_cast %13 : vector<2xf32> to vector<2x1xf32>
    %15 = arith.addf %12, %14 : vector<2x1xf32>
    %c0_12 = arith.constant 0 : index
    %c0_13 = arith.constant 0 : index
    %16 = vector.load %arg6[%c0_12, %c0_13] : memref<2x1xf32, #tpu.memory_space<vmem>>, vector<2x1xf32>
    tpu.vector_store %arg6[%c0_12, %c0_13], %15 {strides = array<i32>} : memref<2x1xf32, #tpu.memory_space<vmem>>, vector<2x1xf32>,
    %c0_i32_14 = arith.constant 0 : i32
    %17 = arith.cmpi eq, %arg1, %c0_i32_14 : i32
    %18 = arith.extui %17 : i1 to i32
    %c0_i32_15 = arith.constant 0 : i32
    %19 = arith.cmpi ne, %18, %c0_i32_15 : i32
    scf.if %19 {
      %c0_16 = arith.constant 0 : index
      %c0_17 = arith.constant 0 : index
      %20 = vector.load %arg5[%c0_16, %c0_17] : memref<2x32xf32, #tpu.memory_space<vmem>>, vector<2x32xf32>
      %c0_18 = arith.constant 0 : index
      %c0_19 = arith.constant 0 : index
      %21 = vector.load %arg6[%c0_18, %c0_19] : memref<2x1xf32, #tpu.memory_space<vmem>>, vector<2x1xf32>
      %22 = vector.broadcast %21 : vector<2x1xf32> to vector<2x32xf32>
      %23 = arith.divf %20, %22 : vector<2x32xf32>
      %c0_20 = arith.constant 0 : index
      %c0_21 = arith.constant 0 : index
      %24 = vector.load %arg4[%c0_20, %c0_21] : memref<2x32xf32, #tpu.memory_space<vmem>>, vector<2x32xf32>
      tpu.vector_store %arg4[%c0_20, %c0_21], %23 {strides = array<i32>} : memref<2x32xf32, #tpu.memory_space<vmem>>, vector<2x32xf32>,
    } else {
    }
    return
  }
  func.func @transform_0(%arg0: i32, %arg1: i32) -> (i32, i32, i32) {
    %c0_i32 = arith.constant 0 : i32
    %c0_i32_0 = arith.constant 0 : i32
    return %arg0, %arg1, %c0_i32 : i32, i32, i32
  }
  func.func @transform_1(%arg0: i32, %arg1: i32) -> (i32, i32) {
    %c0_i32 = arith.constant 0 : i32
    return %arg0, %arg1 : i32, i32
  }
  func.func @transform_2(%arg0: i32, %arg1: i32) -> (i32, i32) {
    %c0_i32 = arith.constant 0 : i32
    %c0_i32_0 = arith.constant 0 : i32
    return %arg0, %c0_i32 : i32, i32
  }
}

</mosaic_0001>

<bundles_post_ra>
// kernel: tpu_custom_call.1
= control target key start
LH: loop header
LB: loop body
LE: loop exit
PB: predicated region body
PF: predicated region fallthrough
CT: control target
= control target key end

     0   :  { %7 = vsyncpa [#allocation5], 0  ;;  %s224_s0 = inlined_call_operand.hbm [shape: f32[2,8,32], index: 0, kind: input, shape index: {}]   ;;  %s225_s1 = inlined_call_operand.vmem [shape: f32[2,8], index: 1, kind: input, shape index: {}]   ;;  %s226_s2 = inlined_call_operand.hbm [shape: f32[2,32], index: 2, kind: output, shape index: {}]  }
   0x1   :  { %8 = vsyncpa [#allocation6], 0  ;;  %s171_s9 = smov [#allocation4]   ;;  %s123_s13 = scalar_lea.hbm %s224_s0, 256 }
   0x2   :  { %s14_s10 = sshll.u32 %s171_s9, 4  ;;  %p124_p0 = scmp.ne.s32.totalorder %s224_s0, %s123_s13  ;;  %s15_s10 = int_to_ptr.vmem [resolvable:$true] %s14_s10 }
   0x3   :  { %p127_p1 = scmp.lt.u32.totalorder %s123_s13, %s224_s0 }
   0x5   :  { %p129_p2 = pnand %p127_p1, %p124_p0 }
   0x7   :  { %132 = shalt.err (!%p129_p2)
}
   0x8   :  { %s133_s18 = scalar_lea.vmem %s15_s10, 256  ;;  %p138_p4 = scmp.lt.s32.totalorder %s15_s10, %s15_s10 }
   0x9   :  { %p134_p3 = scmp.ne.s32.totalorder %s15_s10, %s133_s18  ;;  %p139_p5 = scmp.lt.s32.totalorder %s133_s18, %s133_s18 }
   0xb   :  { %p140_p6 = por %p139_p5, %p138_p4 }
   0xd   :  { %p141_p7 = pnand %p140_p6, %p134_p3 }
   0xf   :  { %144 = shalt.err (!%p141_p7)
}
  0x10   :  { %s172_s19 = smov 128   ;;  %s173_s20 = smov 8  }
  0x11   :  { %20 = dma.hbm_to_vmem [thread:$0]  %s224_s0, 256, %s15_s10, [#allocation5], %s172_s19, %s172_s19, %s173_s20  }
  0x12   :  { %167 = dma.done.wait [#allocation5], 256  }
  0x13   :  { %168 = vsyncadd [#allocation5], 4294967040  ;;  %vm32_vm0 = vcmask 1024   ;;  %v174_v0 = vmov 0.0   ;;  %vm78_vm1 = vcmask 58368   ;;  %v38_v3 = vlaneseq  ;;  %v35_v10 = vld [vmem:[#allocation4 + $0x8] sm:$0xff] }
  0x14   :  { %33 = vst.msk [vmem:[#allocation3] sm:$0x3] %vm32_vm0, %v174_v0  ;;  %v36_v1 = vld [vmem:[%s225_s1] sm:$0x3]  ;;  %v175_v8 = vmov 0   ;;  %vm54_vm2 = vcmask 261120  }
  0x15   :  { %v79_v2 = vsel %vm78_vm1, %v36_v1, 0.0  ;;  %v39_v4 = vshrl.u32 %v38_v3, 7  ;;  %119 = vset.pattern.permute.xlu1 %v175_v8  ;;  %120 = vset.pattern.permute.xlu0 %v175_v8  ;;  %vm30_vm3 = vcmask 254976   ;;  %v34_v19 = vld [vmem:[#allocation4] sm:$0xff]  ;;  %vm71_vm4 = vcmask 1041409   ;;  %s176_s0 = smov [#allocation7]  }
  0x16   :  { %80 = vadd.xlane.f32.xlu0 %v79_v2  ;;  %31 = vst.msk [vmem:[#allocation2] sm:$0x3] %vm30_vm3, %v174_v0  ;;  %s104_s1 = sshll.u32 %s176_s0, 4  ;;  %s105_s1 = int_to_ptr.vmem [resolvable:$true] %s104_s1 }
  0x17   :  { %v47_v5 = vsub.s32 1, %v39_v4  ;;  %v40_v7 = vsub.s32 0, %v39_v4  ;;  %s145_s25 = scalar_lea.vmem %s105_s1, 32  ;;  %p150_p9 = scmp.lt.s32.totalorder %s105_s1, %s105_s1 }
  0x18   :  { %p146_p8 = scmp.ne.s32.totalorder %s105_s1, %s145_s25  ;;  %p151_p10 = scmp.lt.s32.totalorder %s145_s25, %s145_s25 }
  0x19   :  { %v48_v6 = vrot.slane %v36_v1, %v47_v5  ;;  %v41_v9 = vrot.slane %v36_v1, %v40_v7 }
  0x1a   :  { %p152_p11 = por %p151_p10, %p150_p9 }
  0x1b   :  { %50 = vbcast.lane.b32.xlu1 %v48_v6, 256  ;;  %v77_v15 = vld [vmem:[#allocation3] sm:$0x3] }
  0x1c   :  { %p153_p12 = pnand %p152_p11, %p146_p8 }
  0x1d   :  { %v37_v34 = vld [vmem:[#allocation2] sm:$0x3] }
  0x2c   :  { %43 = vbcast.lane.b32.xlu0 %v41_v9, 256 }
  0x8d   :  { %v51_v11 = vpop.permute.xlu1 %50 }
  0x8e   :  { %v53_v12 = vmul.f32 %v51_v11, %v35_v10 }
  0x90   :  { %v62_v13 = vsel %vm54_vm2, %v53_v12, 0.0 }
  0x91   :  { %v63_v14 = vrot.slane %v62_v13, 4 }
  0x93   :  { %v64_v17 = vadd.f32 %v63_v14, %v62_v13 }
  0x95   :  { %v65_v20 = vrot.slane %v64_v17, 2 }
  0x97   :  { %v66_v24 = vadd.f32 %v65_v20, %v64_v17 }
  0x99   :  { %v67_v28 = vrot.slane %v66_v24, 1 }
  0x9b   :  { %v68_v31 = vadd.f32 %v67_v28, %v66_v24 }
  0xa3   :  { %v81_v16 = vpop.xlane.xlu0 %80 }
  0xa4   :  { %v82_v18 = vadd.f32 %v81_v16, %v77_v15 }
  0xa6   :  { %84 = vst.msk [vmem:[#allocation3] sm:$0x3] %vm32_vm0, %v82_v18 }
  0xa7   :  { %v44_v21 = vpop.permute.xlu0 %43 }
  0xa8   :  { %v52_v22 = vmul.f32 %v44_v21, %v34_v19 }
  0xaa   :  { %v55_v23 = vsel %vm54_vm2, %v52_v22, 0.0 }
  0xab   :  { %v56_v25 = vrot.slane %v55_v23, 4 }
  0xad   :  { %v89_v26 = vld [vmem:[#allocation3] sm:$0x3]  ;;  %v57_v27 = vadd.f32 %v56_v25, %v55_v23 }
  0xae   :  { %92 = vperm.xlu1 %119, %v89_v26  }
  0xaf   :  { %v58_v29 = vrot.slane %v57_v27, 2 }
  0xb1   :  { %v59_v30 = vadd.f32 %v58_v29, %v57_v27 }
  0xb3   :  { %v60_v32 = vrot.slane %v59_v30, 1 }
  0xb5   :  { %v61_v33 = vadd.f32 %v60_v32, %v59_v30 }
  0xb7   :  { %v72_v35 = vsel %vm71_vm4, %v68_v31, %v61_v33 }
  0xb8   :  { %v74_v36 = vadd.f32 %v72_v35, %v37_v34 }
  0xba   :  { %76 = vst.msk [vmem:[#allocation2] sm:$0x3] %vm30_vm3, %v74_v36 }
  0xc1   :  { %v88_v39 = vld [vmem:[#allocation2] sm:$0x3] }
 0x12d   :  { %v93_v37 = vpop.permute.xlu1 %92 }
 0x12e   :  { %121 = vrcp.f32 %v93_v37 }
 0x138   :  { %v122_v38 = vpop.eup %121 }
 0x139   :  { %v96_v40 = vmul.f32 %v122_v38, %v88_v39 }
 0x13b   :  { %97 = vst.msk [vmem:[#allocation7] sm:$0x3] %vm30_vm3, %v96_v40 }
 0x13c   :  { %156 = shalt.err (!%p153_p12)
}
 0x13d   :  { %s157_s28 = scalar_lea.hbm %s226_s2, 32 }
 0x13e   :  { %p158_p13 = scmp.ne.s32.totalorder %s226_s2, %s157_s28  ;;  %p161_p0 = scmp.lt.u32.totalorder %s157_s28, %s226_s2 }
 0x140   :  { %p163_p1 = pnand %p161_p0, %p158_p13 }
 0x142   :  { %166 = shalt.err (!%p163_p1)
}
 0x143   :  { %107 = dma.vmem_to_hbm [thread:$0]  %s105_s1, 32, %s226_s2, [#allocation6]  }
 0x144   :  { %169 = dma.done.wait [#allocation6], 32  }
 0x145   :  { %170 = vsyncadd [#allocation6], 4294967264 }
 0x146   :  { %111 = vsyncpa [#allocation5], 1 }
 0x147   :  { %112 = vsyncpa [#allocation6], 1 }

</bundles_post_ra>
